<compile_context>
chip_gen: v7x
topology: tpu7x:2x2x1
jax: 0.10.0
libtpu: 0.0.40
codegen_flags: <defaults>
</compile_context>

<pallas_src>
import functools

import jax
import jax.numpy as jnp
from jax.experimental import pallas as pl
from jax.experimental.pallas import tpu as pltpu

GAMMA = 1.5
ALPHA = 0.25
LANES = 128
_PAD_LOGIT = -1.0e4   # exp(-|pad|) flushes to 0 in f32 -> padded loss is exactly 0


def _focal_loss_kernel(pred_ref, true_ref, out_ref, *, gamma, alpha, chunk, n_chunks):
    @pl.when(pl.program_id(1) == 0)
    def _():
        out_ref[...] = jnp.zeros_like(out_ref)

    def body(c, acc):
        r0 = pl.multiple_of(c * chunk, chunk)
        x = pred_ref[pl.ds(r0, chunk), :].astype(jnp.float32)
        y = true_ref[pl.ds(r0, chunk), :].astype(jnp.float32)

        # Shared exponential: t = exp(-|x|) feeds both BCE-with-logits and sigmoid.
        t = jnp.exp(-jnp.abs(x))
        # BCEWithLogitsLoss(reduction='none'): max(x,0) - x*y + log(1 + exp(-|x|))
        bce = jnp.maximum(x, 0.0) - x * y + jnp.log1p(t)
        # sigmoid(x) = 1/(1+t) for x>=0, t/(1+t) for x<0  (single approx vrcp on EUP)
        inv = pl.reciprocal(1.0 + t, approx=True)
        pred_prob = jnp.where(x >= 0.0, inv, t * inv)

        p_t = y * pred_prob + (1.0 - y) * (1.0 - pred_prob)
        alpha_factor = y * alpha + (1.0 - y) * (1.0 - alpha)
        z = 1.0 - p_t
        if gamma == 1.5:
            modulating_factor = z * jnp.sqrt(z)      # z**1.5 without pow (log+exp)
        else:
            modulating_factor = jnp.power(z, gamma)
        loss = bce * alpha_factor * modulating_factor

        # (chunk,128) -> (8,128) sublane-group partial sum (VALU only, no scalar path).
        return acc + loss.reshape(chunk // 8, 8, LANES).sum(axis=0)

    acc = jax.lax.fori_loop(0, n_chunks, body, jnp.zeros((8, LANES), jnp.float32))
    out_ref[...] += acc


def _default_num_slices():
    # Only v7x has 2 TensorCores per chip; an extra "parallel" slice buys nothing
    # on single-TC parts (v5e / v6e) and just adds a resident accumulator block.
    try:
        kind = jax.devices()[0].device_kind.lower()
    except Exception:
        return 1
    return 2 if "v7" in kind else 1


def focal_loss(pred, true, gamma=GAMMA, alpha=ALPHA, reduction="mean",
               tile_rows=4096, num_slices=None, compute_chunk_rows=256,
               cast_targets_bf16=True):
    """Focal loss (BCE-with-logits base) fused in a single Pallas TPU kernel."""
    assert pred.shape == true.shape
    n = pred.size
    assert n > 0

    if num_slices is None:
        num_slices = _default_num_slices()

    m = -(-n // LANES)                     # rows of 128 lanes
    m8 = -(-m // 8) * 8                    # round rows up to sublane multiple
    tr = max(8, (int(tile_rows) // 8) * 8)
    tm = min(tr, m8)                       # tile rows (multiple of 8)
    n_slices = num_slices if m8 >= num_slices * tm else 1
    inner_steps = -(-m8 // (n_slices * tm))
    m_pad = n_slices * inner_steps * tm
    n_pad = m_pad * LANES

    pred_flat = pred.reshape(-1)
    true_flat = true.reshape(-1)
    if n_pad != n:
        pad = n_pad - n
        # Pad logits with a large negative value and targets with 0 so padded
        # elements contribute exactly 0 loss -> no in-kernel mask needed.
        pred_flat = jnp.pad(pred_flat, (0, pad), constant_values=_PAD_LOGIT)
        true_flat = jnp.pad(true_flat, (0, pad), constant_values=0)
    if cast_targets_bf16 and true_flat.dtype != jnp.bfloat16:
        # Exact for hard 0/1 targets; cuts streamed HBM bytes 8 -> 6 per element.
        true_flat = true_flat.astype(jnp.bfloat16)
    pred2d = pred_flat.reshape(m_pad, LANES)
    true2d = true_flat.reshape(m_pad, LANES)

    # Decouple DMA tile size from compute chunk size (bounds live temporaries).
    cr = max(8, (int(compute_chunk_rows) // 8) * 8)
    chunk = cr if tm % cr == 0 else tm
    n_chunks = tm // chunk

    kernel = functools.partial(
        _focal_loss_kernel, gamma=float(gamma), alpha=float(alpha),
        chunk=chunk, n_chunks=n_chunks)

    in_bytes = (pred2d.size * pred2d.dtype.itemsize
                + true2d.size * true2d.dtype.itemsize)
    cost = pl.CostEstimate(
        flops=20 * n_pad,
        transcendentals=4 * n_pad,
        bytes_accessed=in_bytes + n_slices * 8 * LANES * 4)

    partial_sums = pl.pallas_call(
        kernel,
        out_shape=jax.ShapeDtypeStruct((n_slices * 8, LANES), jnp.float32),
        grid_spec=pltpu.PrefetchScalarGridSpec(
            num_scalar_prefetch=0,
            grid=(n_slices, inner_steps),
            in_specs=[
                pl.BlockSpec((tm, LANES), lambda s, i: (s * inner_steps + i, 0)),
                pl.BlockSpec((tm, LANES), lambda s, i: (s * inner_steps + i, 0)),
            ],
            out_specs=pl.BlockSpec((8, LANES), lambda s, i: (s, 0)),
        ),
        compiler_params=pltpu.CompilerParams(
            # TODO(synk): on v7x verify the slice axis actually shards across both
            # TensorCores (xprof); if not, switch to pltpu.CORE_PARALLEL / core_map.
            dimension_semantics=("parallel", "arbitrary"),
            vmem_limit_bytes=48 * 1024 * 1024,
        ),
        cost_estimate=cost,
    )(pred2d, true2d)

    total = jnp.sum(partial_sums)
    if reduction == "mean":
        return total / jnp.float32(n)
    elif reduction == "sum":
        return total
    # TODO(synk): reduction='none' (full elementwise loss map output) not implemented.
    raise NotImplementedError("reduction='none' is not supported by this kernel")


def _reference_focal_loss(pred, true, gamma=GAMMA, alpha=ALPHA):
    x = pred.astype(jnp.float32)
    y = true.astype(jnp.float32)
    bce = jnp.maximum(x, 0.0) - x * y + jnp.log1p(jnp.exp(-jnp.abs(x)))
    p = jax.nn.sigmoid(x)
    p_t = y * p + (1.0 - y) * (1.0 - p)
    alpha_factor = y * alpha + (1.0 - y) * (1.0 - alpha)
    modulating_factor = jnp.power(1.0 - p_t, gamma)
    return jnp.mean(bce * alpha_factor * modulating_factor)


if __name__ == "__main__":
    key = jax.random.PRNGKey(0)
    k1, k2, k3, k4 = jax.random.split(key, 4)

    # Typical detection-head style tensors: (B, C, H, W) logits, binary targets.
    pred = jax.random.normal(k1, (2, 4, 16, 16), dtype=jnp.float32) * 2.0
    true = (jax.random.uniform(k2, (2, 4, 16, 16)) > 0.7).astype(jnp.float32)

    loss = jax.block_until_ready(focal_loss(pred, true))
    ref = _reference_focal_loss(pred, true)
    # Tolerance accounts for the approx (EUP vrcp) reciprocal in the sigmoid.
    assert jnp.allclose(loss, ref, rtol=2e-3, atol=1e-5), (loss, ref)

    # Odd-sized input exercises the padding path (logits padded with -1e4 -> 0 loss).
    pred2 = jax.random.normal(k3, (3, 5, 17, 19), dtype=jnp.float32) * 2.0
    true2 = (jax.random.uniform(k4, (3, 5, 17, 19)) > 0.6).astype(jnp.float32)
    loss2 = jax.block_until_ready(focal_loss(pred2, true2))
    ref2 = _reference_focal_loss(pred2, true2)
    assert jnp.allclose(loss2, ref2, rtol=2e-3, atol=1e-5), (loss2, ref2)

    print("KERNEL_OK")
</pallas_src>

<mosaic_0001>
module attributes {stable_mosaic.version = 11 : i64} {
  func.func @_focal_loss_kernel(%arg0: i32, %arg1: i32, %arg2: memref<16x128xf32, #tpu.memory_space<vmem>>, %arg3: memref<16x128xbf16, #tpu.memory_space<vmem>>, %arg4: memref<8x128xf32, #tpu.memory_space<vmem>>) attributes {dimension_semantics = [#tpu.dimension_semantics<parallel>, #tpu.dimension_semantics<arbitrary>], iteration_bounds = array<i64: 1, 1>, scalar_prefetch = 0 : i64, scratch_operands = 0 : i64, tpu.core_type = #tpu.core_type<tc>, window_params = [{transform_indices = @transform_0, window_bounds = array<i64: 16, 128>}, {transform_indices = @transform_1, window_bounds = array<i64: 16, 128>}, {transform_indices = @transform_2, window_bounds = array<i64: 8, 128>}]} {
    %c0_i32 = arith.constant 0 : i32
    %0 = arith.cmpi eq, %arg1, %c0_i32 : i32
    %1 = arith.extui %0 : i1 to i32
    %c0_i32_0 = arith.constant 0 : i32
    %2 = arith.cmpi ne, %1, %c0_i32_0 : i32
    scf.if %2 {
      %cst_18 = arith.constant 0.000000e+00 : f32
      %54 = vector.broadcast %cst_18 : f32 to vector<8x128xf32>
      %c0_19 = arith.constant 0 : index
      %c0_20 = arith.constant 0 : index
      %55 = vector.load %arg4[%c0_19, %c0_20] : memref<8x128xf32, #tpu.memory_space<vmem>>, vector<8x128xf32>
      tpu.vector_store %arg4[%c0_19, %c0_20], %54 {strides = array<i32>} : memref<8x128xf32, #tpu.memory_space<vmem>>, vector<8x128xf32>,
    } else {
    }
    %cst = arith.constant 0.000000e+00 : f32
    %3 = vector.broadcast %cst : f32 to vector<8x128xf32>
    %c0_i32_1 = arith.constant 0 : i32
    %c16_i32 = arith.constant 16 : i32
    %4 = arith.muli %c0_i32_1, %c16_i32 : i32
    %5 = tpu.assume_multiple %4, 16 : i32
    %6 = arith.index_cast %5 : i32 to index
    %c0 = arith.constant 0 : index
    %7 = vector.load %arg2[%6, %c0] : memref<16x128xf32, #tpu.memory_space<vmem>>, vector<16x128xf32>
    %8 = arith.index_cast %5 : i32 to index
    %c0_2 = arith.constant 0 : index
    %9 = vector.load %arg3[%8, %c0_2] : memref<16x128xbf16, #tpu.memory_space<vmem>>, vector<16x128xbf16>
    %10 = arith.extf %9 : vector<16x128xbf16> to vector<16x128xf32>
    %11 = math.absf %7 : vector<16x128xf32>
    %cst_3 = arith.constant 0.000000e+00 : f32
    %12 = vector.broadcast %cst_3 : f32 to vector<16x128xf32>
    %13 = arith.subf %12, %11 : vector<16x128xf32>
    %14 = math.exp %13 : vector<16x128xf32>
    %cst_4 = arith.constant 0.000000e+00 : f32
    %15 = vector.broadcast %cst_4 : f32 to vector<16x128xf32>
    %16 = arith.maximumf %7, %15 : vector<16x128xf32>
    %17 = arith.mulf %7, %10 : vector<16x128xf32>
    %18 = arith.subf %16, %17 : vector<16x128xf32>
    %19 = math.log1p %14 : vector<16x128xf32>
    %20 = arith.addf %18, %19 : vector<16x128xf32>
    %cst_5 = arith.constant 1.000000e+00 : f32
    %21 = vector.broadcast %cst_5 : f32 to vector<16x128xf32>
    %22 = arith.addf %21, %14 : vector<16x128xf32>
    %23 = tpu.reciprocal %22 {approx = true} : vector<16x128xf32> -> vector<16x128xf32>
    %cst_6 = arith.constant 0.000000e+00 : f32
    %24 = vector.broadcast %cst_6 : f32 to vector<16x128xf32>
    %25 = arith.cmpf oge, %7, %24 : vector<16x128xf32>
    %26 = arith.mulf %14, %23 : vector<16x128xf32>
    %27 = arith.select %25, %23, %26 : vector<16x128xi1>, vector<16x128xf32>
    %28 = arith.mulf %10, %27 : vector<16x128xf32>
    %cst_7 = arith.constant 1.000000e+00 : f32
    %29 = vector.broadcast %cst_7 : f32 to vector<16x128xf32>
    %30 = arith.subf %29, %10 : vector<16x128xf32>
    %cst_8 = arith.constant 1.000000e+00 : f32
    %31 = vector.broadcast %cst_8 : f32 to vector<16x128xf32>
    %32 = arith.subf %31, %27 : vector<16x128xf32>
    %33 = arith.mulf %30, %32 : vector<16x128xf32>
    %34 = arith.addf %28, %33 : vector<16x128xf32>
    %cst_9 = arith.constant 2.500000e-01 : f32
    %35 = vector.broadcast %cst_9 : f32 to vector<16x128xf32>
    %36 = arith.mulf %10, %35 : vector<16x128xf32>
    %cst_10 = arith.constant 1.000000e+00 : f32
    %37 = vector.broadcast %cst_10 : f32 to vector<16x128xf32>
    %38 = arith.subf %37, %10 : vector<16x128xf32>
    %cst_11 = arith.constant 7.500000e-01 : f32
    %39 = vector.broadcast %cst_11 : f32 to vector<16x128xf32>
    %40 = arith.mulf %38, %39 : vector<16x128xf32>
    %41 = arith.addf %36, %40 : vector<16x128xf32>
    %cst_12 = arith.constant 1.000000e+00 : f32
    %42 = vector.broadcast %cst_12 : f32 to vector<16x128xf32>
    %43 = arith.subf %42, %34 : vector<16x128xf32>
    %44 = math.sqrt %43 : vector<16x128xf32>
    %45 = arith.mulf %43, %44 : vector<16x128xf32>
    %46 = arith.mulf %20, %41 : vector<16x128xf32>
    %47 = arith.mulf %46, %45 : vector<16x128xf32>
    %48 = vector.shape_cast %47 : vector<16x128xf32> to vector<2x8x128xf32>
    %cst_13 = arith.constant dense<0.000000e+00> : vector<8x128xf32>
    %49 = vector.multi_reduction <add>, %48, %cst_13 [0] : vector<2x8x128xf32> to vector<8x128xf32>
    %50 = arith.addf %3, %49 : vector<8x128xf32>
    %c1_i32 = arith.constant 1 : i32
    %c0_14 = arith.constant 0 : index
    %c0_15 = arith.constant 0 : index
    %51 = vector.load %arg4[%c0_14, %c0_15] : memref<8x128xf32, #tpu.memory_space<vmem>>, vector<8x128xf32>
    %52 = arith.addf %51, %50 : vector<8x128xf32>
    %c0_16 = arith.constant 0 : index
    %c0_17 = arith.constant 0 : index
    %53 = vector.load %arg4[%c0_16, %c0_17] : memref<8x128xf32, #tpu.memory_space<vmem>>, vector<8x128xf32>
    tpu.vector_store %arg4[%c0_16, %c0_17], %52 {strides = array<i32>} : memref<8x128xf32, #tpu.memory_space<vmem>>, vector<8x128xf32>,
    return
  }
  func.func @transform_0(%arg0: i32, %arg1: i32) -> (i32, i32) {
    %c1_i32 = arith.constant 1 : i32
    %0 = arith.muli %arg0, %c1_i32 : i32
    %1 = arith.addi %0, %arg1 : i32
    %c0_i32 = arith.constant 0 : i32
    %c0_i32_0 = arith.constant 0 : i32
    return %1, %c0_i32 : i32, i32
  }
  func.func @transform_1(%arg0: i32, %arg1: i32) -> (i32, i32) {
    %c1_i32 = arith.constant 1 : i32
    %0 = arith.muli %arg0, %c1_i32 : i32
    %1 = arith.addi %0, %arg1 : i32
    %c0_i32 = arith.constant 0 : i32
    %c0_i32_0 = arith.constant 0 : i32
    return %1, %c0_i32 : i32, i32
  }
  func.func @transform_2(%arg0: i32, %arg1: i32) -> (i32, i32) {
    %c0_i32 = arith.constant 0 : i32
    %c0_i32_0 = arith.constant 0 : i32
    return %arg0, %c0_i32 : i32, i32
  }
}

</mosaic_0001>

<bundles_post_ra>
// kernel: tpu_custom_call.1
= control target key start
LH: loop header
LB: loop body
LE: loop exit
PB: predicated region body
PF: predicated region fallthrough
CT: control target
= control target key end

     0   :  { %7 = vsyncpa [#allocation3], 0  ;;  %s330_s0 = inlined_call_operand.hbm [shape: f32[16,128], index: 0, kind: input, shape index: {}]   ;;  %s331_s1 = inlined_call_operand.hbm [shape: bf16[16,128], index: 1, kind: input, shape index: {}]   ;;  %s332_s2 = inlined_call_operand.hbm [shape: f32[8,128], index: 2, kind: output, shape index: {}]  }
   0x1   :  { %8 = vsyncpa [#allocation6], 0 }
   0x2   :  { %9 = vsyncpa [#allocation4], 0  ;;  %s266_s9 = smov [#allocation2]   ;;  %s194_s13 = scalar_lea.hbm %s330_s0, 256 }
   0x3   :  { %s19_s10 = sshll.u32 %s266_s9, 4  ;;  %p195_p0 = scmp.ne.s32.totalorder %s330_s0, %s194_s13  ;;  %s20_s10 = int_to_ptr.vmem [resolvable:$true] %s19_s10 }
   0x4   :  { %p198_p1 = scmp.lt.u32.totalorder %s194_s13, %s330_s0 }
   0x6   :  { %p200_p2 = pnand %p198_p1, %p195_p0 }
   0x8   :  { %203 = shalt.err (!%p200_p2)
}
   0x9   :  { %s204_s18 = scalar_lea.vmem %s20_s10, 256  ;;  %p209_p4 = scmp.lt.s32.totalorder %s20_s10, %s20_s10 }
   0xa   :  { %p205_p3 = scmp.ne.s32.totalorder %s20_s10, %s204_s18  ;;  %p210_p5 = scmp.lt.s32.totalorder %s204_s18, %s204_s18 }
   0xc   :  { %p211_p6 = por %p210_p5, %p209_p4 }
   0xe   :  { %p212_p7 = pnand %p211_p6, %p205_p3 }
  0x10   :  { %215 = shalt.err (!%p212_p7)
}
  0x11   :  { %s267_s19 = smov 128   ;;  %s268_s20 = smov 8  }
  0x12   :  { %25 = dma.hbm_to_vmem [thread:$0]  %s330_s0, 256, %s20_s10, [#allocation3], %s267_s19, %s267_s19, %s268_s20  }
  0x13   :  { %s269_s23 = smov [#allocation5]   ;;  %s216_s27 = scalar_lea.hbm %s331_s1, 128 }
  0x14   :  { %s35_s24 = sshll.u32 %s269_s23, 4  ;;  %p217_p8 = scmp.ne.s32.totalorder %s331_s1, %s216_s27  ;;  %s36_s24 = int_to_ptr.vmem [resolvable:$true] %s35_s24 }
  0x15   :  { %p220_p9 = scmp.lt.u32.totalorder %s216_s27, %s331_s1 }
  0x17   :  { %p222_p10 = pnand %p220_p9, %p217_p8 }
  0x19   :  { %225 = shalt.err (!%p222_p10)
}
  0x1a   :  { %s226_s4 = scalar_lea.vmem %s36_s24, 128  ;;  %p231_p12 = scmp.lt.s32.totalorder %s36_s24, %s36_s24 }
  0x1b   :  { %p227_p11 = scmp.ne.s32.totalorder %s36_s24, %s226_s4  ;;  %p232_p13 = scmp.lt.s32.totalorder %s226_s4, %s226_s4 }
  0x1d   :  { %p233_p0 = por %p232_p13, %p231_p12 }
  0x1f   :  { %p234_p1 = pnand %p233_p0, %p227_p11 }
  0x21   :  { %237 = shalt.err (!%p234_p1)
}
  0x22   :  { %s270_s0 = smov 64   ;;  %s271_s5 = smov 4  }
  0x23   :  { %41 = dma.hbm_to_vmem [thread:$0]  %s331_s1, 128, %s36_s24, [#allocation6], %s270_s0, %s270_s0, %s271_s5  }
  0x24   :  { %260 = dma.done.wait [#allocation3], 256  }
  0x25   :  { %261 = vsyncadd [#allocation3], 4294967040 }
  0x26   :  { %262 = dma.done.wait [#allocation6], 128  }
  0x27   :  { %263 = vsyncadd [#allocation6], 4294967168  ;;  %v57_v0 = vld [vmem:[#allocation2] sm:$0xff]  ;;  %v312_v1 = vld [vmem:[#allocation2 + $0x8] sm:$0xff]  ;;  %s272_s1 = smov [#allocation7]  }
  0x28   :  { %v63_v2 = vand.u32 2147483647, %v57_v0  ;;  %v64_v3 = vand.u32 2147483647, %v312_v1  ;;  %v167_v12 = vld [vmem:[#allocation5] sm:$0xff]   ;;  %vm101_vm0 = vcmp.ge.f32.partialorder %v57_v0, 0.0 }
  0x29   :  { %v168_v13 = vunpack.c.l.bf16 %v167_v12  ;;  %v169_v14 = vunpack.c.h.bf16 %v167_v12  ;;  %vm102_vm1 = vcmp.ge.f32.partialorder %v312_v1, 0.0  ;;  %v71_v41 = vmax.f32 %v57_v0, 0.0  ;;  %s156_s8 = sshll.u32 %s272_s1, 4  ;;  %s157_s8 = int_to_ptr.vmem [resolvable:$true] %s156_s8 }
  0x2a   :  { %v65_v4 = vsub.f32 0.0, %v63_v2  ;;  %v66_v5 = vsub.f32 0.0, %v64_v3  ;;  %v72_v43 = vmax.f32 %v312_v1, 0.0  ;;  %s238_s9 = scalar_lea.vmem %s157_s8, 128  ;;  %p243_p3 = scmp.lt.s32.totalorder %s157_s8, %s157_s8 }
  0x2b   :  { %v109_v19 = vsub.f32 1.0, %v168_v13  ;;  %v110_v21 = vsub.f32 1.0, %v169_v14  ;;  %v73_v42 = vmul.f32 %v168_v13, %v57_v0  ;;  %v74_v44 = vmul.f32 %v169_v14, %v312_v1  ;;  %p239_p2 = scmp.ne.s32.totalorder %s157_s8, %s238_s9  ;;  %p244_p4 = scmp.lt.s32.totalorder %s238_s9, %s238_s9 }
  0x2c   :  { %v67_v6 = vmul.f32 1.442695, %v65_v4  ;;  %v69_v7 = vmul.f32 1.442695, %v66_v5  ;;  %v117_v50 = vmul.f32 0.25, %v168_v13  ;;  %v118_v54 = vmul.f32 0.25, %v169_v14 }
  0x2d   :  { %v75_v49 = vsub.f32 %v71_v41, %v73_v42  ;;  %v119_v51 = vmul.f32 0.75, %v109_v19  ;;  %v76_v52 = vsub.f32 %v72_v43, %v74_v44  ;;  %v120_v55 = vmul.f32 0.75, %v110_v21  ;;  %p245_p5 = por %p244_p4, %p243_p3 }
  0x2e   :  { %178 = vpow2.f32 %v67_v6 }
  0x2f   :  { %180 = vpow2.f32 %v69_v7  ;;  %v121_v58 = vadd.f32 %v119_v51, %v117_v50  ;;  %v122_v61 = vadd.f32 %v120_v55, %v118_v54  ;;  %p246_p6 = pnand %p245_p5, %p239_p2 }
  0x38   :  { %v179_v8 = vpop.eup %178 }
  0x39   :  { %v181_v9 = vpop.eup %180  ;;  %v77_v10 = vadd.f32 1.0, %v179_v8  ;;  %v80_v27 = vmul.f32 -0.5, %v179_v8  ;;  %v83_v36 = vand.u32 2147483647, %v179_v8 }
  0x3a   :  { %v86_v11 = vadd.f32 1.0, %v181_v9  ;;  %v89_v29 = vmul.f32 -0.5, %v181_v9  ;;  %v92_v40 = vand.u32 2147483647, %v181_v9 }
  0x3b   :  { %182 = vrcp.f32 %v77_v10  ;;  %v81_v33 = vadd.f32 1.0, %v80_v27  ;;  %vm84_vm2 = vcmp.lt.f32.partialorder %v83_v36, 0.0004427343 }
  0x3c   :  { %184 = vrcp.f32 %v86_v11  ;;  %v90_v37 = vadd.f32 1.0, %v89_v29  ;;  %vm93_vm3 = vcmp.lt.f32.partialorder %v92_v40, 0.0004427343 }
  0x3d   :  { %186 = vlog2.f32 %v77_v10  ;;  %v82_v46 = vmul.f32 %v179_v8, %v81_v33 }
  0x3e   :  { %188 = vlog2.f32 %v86_v11  ;;  %v91_v48 = vmul.f32 %v181_v9, %v90_v37 }
  0x45   :  { %v183_v15 = vpop.eup %182 }
  0x46   :  { %v185_v16 = vpop.eup %184  ;;  %v103_v17 = vmul.f32 %v183_v15, %v179_v8 }
  0x47   :  { %v104_v18 = vmul.f32 %v185_v16, %v181_v9  ;;  %v187_v35 = vpop.eup %186 }
  0x48   :  { %v105_v20 = vsel %vm101_vm0, %v183_v15, %v103_v17  ;;  %v189_v39 = vpop.eup %188  ;;  %v79_v45 = vmul.f32 0.6931472, %v187_v35 }
  0x49   :  { %v106_v22 = vsel %vm102_vm1, %v185_v16, %v104_v18  ;;  %v107_v23 = vmul.f32 %v168_v13, %v105_v20  ;;  %v111_v24 = vsub.f32 1.0, %v105_v20  ;;  %v88_v47 = vmul.f32 0.6931472, %v189_v39 }
  0x4a   :  { %v108_v25 = vmul.f32 %v169_v14, %v106_v22  ;;  %v112_v26 = vsub.f32 1.0, %v106_v22  ;;  %v85_v53 = vsel %vm84_vm2, %v82_v46, %v79_v45 }
  0x4b   :  { %v113_v28 = vmul.f32 %v111_v24, %v109_v19  ;;  %v94_v56 = vsel %vm93_vm3, %v91_v48, %v88_v47  ;;  %v95_v57 = vadd.f32 %v85_v53, %v75_v49 }
  0x4c   :  { %v114_v30 = vmul.f32 %v112_v26, %v110_v21  ;;  %v96_v60 = vadd.f32 %v94_v56, %v76_v52 }
  0x4d   :  { %v115_v31 = vadd.f32 %v113_v28, %v107_v23  ;;  %v141_v4 = vmul.f32 %v121_v58, %v95_v57 }
  0x4e   :  { %v116_v32 = vadd.f32 %v114_v30, %v108_v25  ;;  %v142_v7 = vmul.f32 %v122_v61, %v96_v60 }
  0x4f   :  { %v123_v34 = vsub.f32 1.0, %v115_v31 }
  0x50   :  { %v124_v38 = vsub.f32 1.0, %v116_v32 }
  0x51   :  { %190 = vrsqrt.f32 %v123_v34  ;;  %vm127_vm4 = vcmp.eq.f32.partialorder %v123_v34, inf  ;;  %v130_v62 = vand.u32 2147483648, %v123_v34  ;;  %vm129_vm5 = vcmp.eq.f32.partialorder %v123_v34, 0.0 }
  0x52   :  { %192 = vrsqrt.f32 %v124_v38  ;;  %vm134_vm6 = vcmp.eq.f32.partialorder %v124_v38, inf  ;;  %v137_v1 = vand.u32 2147483648, %v124_v38  ;;  %vm136_vm7 = vcmp.eq.f32.partialorder %v124_v38, 0.0 }
  0x5b   :  { %v191_v59 = vpop.eup %190 }
  0x5c   :  { %v193_v63 = vpop.eup %192  ;;  %v126_v0 = vmul.f32 %v191_v59, %v123_v34 }
  0x5d   :  { %v133_v2 = vmul.f32 %v193_v63, %v124_v38 }
  0x5e   :  { %v128_v3 = vsel %vm127_vm4, %v123_v34, %v126_v0 }
  0x5f   :  { %v131_v5 = vsel %vm129_vm5, %v130_v62, %v128_v3  ;;  %v135_v6 = vsel %vm134_vm6, %v124_v38, %v133_v2 }
  0x60   :  { %v138_v8 = vsel %vm136_vm7, %v137_v1, %v135_v6  ;;  %v139_v9 = vmul.f32 %v131_v5, %v123_v34 }
  0x61   :  { %v140_v10 = vmul.f32 %v138_v8, %v124_v38 }
  0x62   :  { %v143_v11 = vmul.f32 %v141_v4, %v139_v9 }
  0x63   :  { %v144_v12 = vmul.f32 %v142_v7, %v140_v10 }
  0x65   :  { %v145_v13 = vadd.f32 %v144_v12, %v143_v11 }
  0x67   :  { %149 = vst [vmem:[#allocation7] sm:$0xff] %v145_v13 }
  0x68   :  { %249 = shalt.err (!%p246_p6)
}
  0x69   :  { %s250_s12 = scalar_lea.hbm %s332_s2, 128 }
  0x6a   :  { %p251_p7 = scmp.ne.s32.totalorder %s332_s2, %s250_s12  ;;  %p254_p8 = scmp.lt.u32.totalorder %s250_s12, %s332_s2 }
  0x6c   :  { %p256_p9 = pnand %p254_p8, %p251_p7 }
  0x6e   :  { %259 = shalt.err (!%p256_p9)
}
  0x6f   :  { %159 = dma.vmem_to_hbm [thread:$0]  %s157_s8, 128, %s332_s2, [#allocation4]  }
  0x70   :  { %264 = dma.done.wait [#allocation4], 128  }
  0x71   :  { %265 = vsyncadd [#allocation4], 4294967168 }
  0x72   :  { %163 = vsyncpa [#allocation3], 1 }
  0x73   :  { %164 = vsyncpa [#allocation6], 1 }
  0x74   :  { %165 = vsyncpa [#allocation4], 1 }

</bundles_post_ra>
